<compile_context>
chip_gen: v5e
topology: v5e:2x2
jax: 0.10.0
libtpu: 0.0.40
codegen_flags: <defaults>
</compile_context>

<pallas_src>
import jax
import jax.numpy as jnp
import numpy as np
from jax.experimental import pallas as pl
from jax.experimental.pallas import tpu as pltpu

_LN_EPS = 1e-5  # PyTorch nn.LayerNorm default


def _erf(x):
    # Abramowitz & Stegun 7.1.26 polynomial (max abs err 1.5e-7); built only
    # from ops guaranteed to lower in Mosaic (exp / mul / add / div / where).
    a1, a2, a3, a4, a5 = (0.254829592, -0.284496736, 1.421413741,
                          -1.453152027, 1.061405429)
    p = 0.3275911
    sgn = jnp.where(x >= 0.0, 1.0, -1.0)
    ax = jnp.abs(x)
    t = 1.0 / (1.0 + p * ax)
    poly = ((((a5 * t + a4) * t + a3) * t + a2) * t + a1) * t
    return sgn * (1.0 - poly * jnp.exp(-ax * ax))


def _gelu_exact(x):
    # nn.GELU() default is the exact (erf) GELU.
    return 0.5 * x * (1.0 + _erf(x * 0.7071067811865476))


def _layer_norm(t, gamma, beta):
    # One-pass variance (E[x^2] - mu^2): halves the per-row cross-lane reductions.
    mu = jnp.mean(t, axis=-1, keepdims=True)
    ms = jnp.mean(t * t, axis=-1, keepdims=True)
    var = jnp.maximum(ms - mu * mu, 0.0)
    return (t - mu) * jax.lax.rsqrt(var + _LN_EPS) * gamma + beta


def _block_kernel(num_heads):
    H = num_heads

    def kernel(x_ref, g1_ref, be1_ref,
               wqkv_ref, bqkv_ref, wp_ref, bp_ref,
               g2_ref, be2_ref,
               w1_ref, b1_ref, w2_ref, b2_ref,
               o_ref):
        B, N, C = x_ref.shape
        d = C // H
        BN = B * N

        x = x_ref[...].reshape(BN, C)        # leading-dim collapse (layout preserving)

        # ------------------ attention branch ------------------
        h1 = _layer_norm(x, g1_ref[...], be1_ref[...])                     # (BN, C)

        # ONE fused, lane-dense QKV projection: (BN, C) @ (C, 3C).
        qkv = jnp.dot(h1, wqkv_ref[...],
                      preferred_element_type=jnp.float32) + bqkv_ref[...]  # (BN, 3C)
        qkv = qkv.reshape(B, N, 3 * C)       # leading split; N == one sublane group

        # Per-head score/softmax/PV, batched over B (3-D einsums). H is small &
        # static -> unrolled loop; head splits are static lane slices of the
        # dense QKV result (no per-head matmuls, no broadcast copies).
        heads = []
        for h in range(H):
            q_h = qkv[:, :, h * d:(h + 1) * d]                             # (B, N, d)
            k_h = qkv[:, :, C + h * d:C + (h + 1) * d]
            v_h = qkv[:, :, 2 * C + h * d:2 * C + (h + 1) * d]
            # NOTE: the reference module applies NO 1/sqrt(d) scale to scores.
            s = jnp.einsum("bnd,bmd->bnm", q_h, k_h,
                           preferred_element_type=jnp.float32)             # (B, N, N)
            s = s - jnp.max(s, axis=-1, keepdims=True)
            p = jnp.exp(s)
            inv = pl.reciprocal(jnp.sum(p, axis=-1, keepdims=True), approx=True)
            heads.append(jnp.einsum("bnm,bmd->bnd", p, v_h,
                                    preferred_element_type=jnp.float32) * inv)
        # Reassemble heads along the channel axis (single small relayout), then
        # ONE dense (BN, C) @ (C, C) output projection (contraction depth C).
        o = jnp.concatenate(heads, axis=-1).reshape(BN, C)
        att = jnp.dot(o, wp_ref[...],
                      preferred_element_type=jnp.float32) + bp_ref[...]

        x1 = x + att                                                       # residual 1

        # ------------------ MLP branch ------------------
        h2 = _layer_norm(x1, g2_ref[...], be2_ref[...])
        m = jnp.dot(h2, w1_ref[...], preferred_element_type=jnp.float32) + b1_ref[...]
        m = _gelu_exact(m)
        m = jnp.dot(m, w2_ref[...], preferred_element_type=jnp.float32) + b2_ref[...]

        o_ref[...] = (x1 + m).reshape(B, N, C).astype(o_ref.dtype)

    return kernel


def block_pallas(x, params, num_heads):
    B, N, C = x.shape
    (g1, be1, wq, bq, wkv, bkv, wp, bp, g2, be2, w1, b1, w2, b2) = params
    hidden = w1.shape[0]

    # ---- host-side (one-time) weight preparation ----
    # PyTorch Linear stores (out, in); transpose to (in, out) and fuse q / kv
    # column-wise so the kernel issues a single (C, 3C) projection.
    # Column order [q | k | v] matches kv.reshape(B,N,2,H,d): first C cols = k.
    w_qkv = jnp.concatenate([wq.T, wkv.T], axis=1)                          # (C, 3C)
    b_qkv = jnp.concatenate([bq, bkv]).reshape(1, 3 * C)                    # (1, 3C)
    wp_t = wp.T                                                             # (C, C)
    w1_t, w2_t = w1.T, w2.T                                                 # (C,h),(h,C)
    row = lambda v: v.reshape(1, -1)

    full = lambda shape: pl.BlockSpec(shape, lambda i: (0,) * len(shape))

    # Single grid step: per-step work here is tiny, so a multi-step / multi-core
    # grid only adds fixed per-step overhead and duplicated weight DMA (v7x
    # feedback); whole-array blocks satisfy the (8,128) rule by equaling dims.
    return pl.pallas_call(
        _block_kernel(num_heads),
        out_shape=jax.ShapeDtypeStruct((B, N, C), x.dtype),
        grid_spec=pltpu.PrefetchScalarGridSpec(
            num_scalar_prefetch=0,
            grid=(1,),
            in_specs=[
                pl.BlockSpec((B, N, C), lambda i: (0, 0, 0)),   # x
                full((1, C)), full((1, C)),                     # LN1 gamma / beta
                full((C, 3 * C)), full((1, 3 * C)),             # fused QKV w / b
                full((C, C)), full((1, C)),                     # proj w / b
                full((1, C)), full((1, C)),                     # LN2 gamma / beta
                full((C, hidden)), full((1, hidden)),           # fc1 w / b
                full((hidden, C)), full((1, C)),                # fc2 w / b
            ],
            out_specs=pl.BlockSpec((B, N, C), lambda i: (0, 0, 0)),
        ),
        compiler_params=pltpu.CompilerParams(
            dimension_semantics=("arbitrary",)),
    )(x, row(g1), row(be1), w_qkv, b_qkv, wp_t, row(bp),
      row(g2), row(be2), w1_t, row(b1), w2_t, row(b2))


def block_ref(x, params, num_heads):
    # Pure-JAX reference reproducing the PyTorch Block forward (eval mode).
    (g1, be1, wq, bq, wkv, bkv, wp, bp, g2, be2, w1, b1, w2, b2) = params
    B, N, C = x.shape
    H = num_heads
    d = C // H

    def ln(t, g, b):
        mu = jnp.mean(t, axis=-1, keepdims=True)
        var = jnp.mean((t - mu) ** 2, axis=-1, keepdims=True)
        return (t - mu) / jnp.sqrt(var + _LN_EPS) * g + b

    h = ln(x, g1, be1)
    q = h @ wq.T + bq
    kv = h @ wkv.T + bkv
    k, v = kv[..., :C], kv[..., C:]
    q = q.reshape(B, N, H, d).transpose(0, 2, 1, 3)
    k = k.reshape(B, N, H, d).transpose(0, 2, 1, 3)
    v = v.reshape(B, N, H, d).transpose(0, 2, 1, 3)
    attn = jax.nn.softmax(jnp.einsum("bhqd,bhkd->bhqk", q, k), axis=-1)
    o = jnp.einsum("bhqk,bhkd->bhqd", attn, v).transpose(0, 2, 1, 3).reshape(B, N, C)
    x = x + (o @ wp.T + bp)
    h2 = ln(x, g2, be2)
    m = jax.nn.gelu(h2 @ w1.T + b1, approximate=False)
    m = m @ w2.T + b2
    return x + m


if __name__ == "__main__":
    B, N, C, H = 2, 8, 32, 4          # dim=32, num_heads=4, mlp_ratio=1 -> hidden=32
    hidden = C
    key = jax.random.PRNGKey(0)
    ks = jax.random.split(key, 15)
    x = jax.random.normal(ks[0], (B, N, C), dtype=jnp.float32)
    g1 = 1.0 + 0.1 * jax.random.normal(ks[1], (C,), dtype=jnp.float32)
    be1 = 0.1 * jax.random.normal(ks[2], (C,), dtype=jnp.float32)
    wq = 0.1 * jax.random.normal(ks[3], (C, C), dtype=jnp.float32)
    bq = 0.1 * jax.random.normal(ks[4], (C,), dtype=jnp.float32)
    wkv = 0.1 * jax.random.normal(ks[5], (2 * C, C), dtype=jnp.float32)
    bkv = 0.1 * jax.random.normal(ks[6], (2 * C,), dtype=jnp.float32)
    wp = 0.1 * jax.random.normal(ks[7], (C, C), dtype=jnp.float32)
    bp = 0.1 * jax.random.normal(ks[8], (C,), dtype=jnp.float32)
    g2 = 1.0 + 0.1 * jax.random.normal(ks[9], (C,), dtype=jnp.float32)
    be2 = 0.1 * jax.random.normal(ks[10], (C,), dtype=jnp.float32)
    w1 = 0.1 * jax.random.normal(ks[11], (hidden, C), dtype=jnp.float32)
    b1 = 0.1 * jax.random.normal(ks[12], (hidden,), dtype=jnp.float32)
    w2 = 0.1 * jax.random.normal(ks[13], (C, hidden), dtype=jnp.float32)
    b2 = 0.1 * jax.random.normal(ks[14], (C,), dtype=jnp.float32)
    params = (g1, be1, wq, bq, wkv, bkv, wp, bp, g2, be2, w1, b1, w2, b2)

    out = jax.block_until_ready(block_pallas(x, params, H))
    ref = block_ref(x, params, H)
    # Tolerance accounts for the approx EUP reciprocal in the softmax (~2^-12
    # rel err), the one-pass LN variance and the 1.5e-7-accurate erf poly;
    # all matmuls accumulate in f32.
    np.testing.assert_allclose(np.asarray(out), np.asarray(ref), rtol=2e-3, atol=2e-3)
    print("KERNEL_OK")
</pallas_src>

<mosaic_0001>
module attributes {stable_mosaic.version = 11 : i64} {
  func.func @kernel(%arg0: i32, %arg1: memref<2x8x32xf32, #tpu.memory_space<vmem>>, %arg2: memref<1x32xf32, #tpu.memory_space<vmem>>, %arg3: memref<1x32xf32, #tpu.memory_space<vmem>>, %arg4: memref<32x96xf32, #tpu.memory_space<vmem>>, %arg5: memref<1x96xf32, #tpu.memory_space<vmem>>, %arg6: memref<32x32xf32, #tpu.memory_space<vmem>>, %arg7: memref<1x32xf32, #tpu.memory_space<vmem>>, %arg8: memref<1x32xf32, #tpu.memory_space<vmem>>, %arg9: memref<1x32xf32, #tpu.memory_space<vmem>>, %arg10: memref<32x32xf32, #tpu.memory_space<vmem>>, %arg11: memref<1x32xf32, #tpu.memory_space<vmem>>, %arg12: memref<32x32xf32, #tpu.memory_space<vmem>>, %arg13: memref<1x32xf32, #tpu.memory_space<vmem>>, %arg14: memref<2x8x32xf32, #tpu.memory_space<vmem>>) attributes {dimension_semantics = [#tpu.dimension_semantics<arbitrary>], iteration_bounds = array<i64: 1>, scalar_prefetch = 0 : i64, scratch_operands = 0 : i64, tpu.core_type = #tpu.core_type<tc>, window_params = [{pipeline_mode = #tpu.pipeline_mode<synchronous>, transform_indices = @transform_0, window_bounds = array<i64: 2, 8, 32>}, {pipeline_mode = #tpu.pipeline_mode<synchronous>, transform_indices = @transform_1, window_bounds = array<i64: 1, 32>}, {pipeline_mode = #tpu.pipeline_mode<synchronous>, transform_indices = @transform_2, window_bounds = array<i64: 1, 32>}, {pipeline_mode = #tpu.pipeline_mode<synchronous>, transform_indices = @transform_3, window_bounds = array<i64: 32, 96>}, {pipeline_mode = #tpu.pipeline_mode<synchronous>, transform_indices = @transform_4, window_bounds = array<i64: 1, 96>}, {pipeline_mode = #tpu.pipeline_mode<synchronous>, transform_indices = @transform_5, window_bounds = array<i64: 32, 32>}, {pipeline_mode = #tpu.pipeline_mode<synchronous>, transform_indices = @transform_6, window_bounds = array<i64: 1, 32>}, {pipeline_mode = #tpu.pipeline_mode<synchronous>, transform_indices = @transform_7, window_bounds = array<i64: 1, 32>}, {pipeline_mode = #tpu.pipeline_mode<synchronous>, transform_indices = @transform_8, window_bounds = array<i64: 1, 32>}, {pipeline_mode = #tpu.pipeline_mode<synchronous>, transform_indices = @transform_9, window_bounds = array<i64: 32, 32>}, {pipeline_mode = #tpu.pipeline_mode<synchronous>, transform_indices = @transform_10, window_bounds = array<i64: 1, 32>}, {pipeline_mode = #tpu.pipeline_mode<synchronous>, transform_indices = @transform_11, window_bounds = array<i64: 32, 32>}, {pipeline_mode = #tpu.pipeline_mode<synchronous>, transform_indices = @transform_12, window_bounds = array<i64: 1, 32>}, {pipeline_mode = #tpu.pipeline_mode<synchronous>, transform_indices = @transform_13, window_bounds = array<i64: 2, 8, 32>}]} {
    %c0 = arith.constant 0 : index
    %c0_0 = arith.constant 0 : index
    %c0_1 = arith.constant 0 : index
    %0 = vector.load %arg1[%c0, %c0_0, %c0_1] : memref<2x8x32xf32, #tpu.memory_space<vmem>>, vector<2x8x32xf32>
    %1 = vector.shape_cast %0 : vector<2x8x32xf32> to vector<16x32xf32>
    %c0_2 = arith.constant 0 : index
    %c0_3 = arith.constant 0 : index
    %2 = vector.load %arg2[%c0_2, %c0_3] : memref<1x32xf32, #tpu.memory_space<vmem>>, vector<1x32xf32>
    %c0_4 = arith.constant 0 : index
    %c0_5 = arith.constant 0 : index
    %3 = vector.load %arg3[%c0_4, %c0_5] : memref<1x32xf32, #tpu.memory_space<vmem>>, vector<1x32xf32>
    %cst = arith.constant dense<0.000000e+00> : vector<16xf32>
    %4 = vector.multi_reduction <add>, %1, %cst [1] : vector<16x32xf32> to vector<16xf32>
    %5 = vector.shape_cast %4 : vector<16xf32> to vector<16x1xf32>
    %cst_6 = arith.constant 3.200000e+01 : f32
    %6 = vector.broadcast %cst_6 : f32 to vector<16x1xf32>
    %7 = arith.divf %5, %6 : vector<16x1xf32>
    %8 = arith.mulf %1, %1 : vector<16x32xf32>
    %cst_7 = arith.constant dense<0.000000e+00> : vector<16xf32>
    %9 = vector.multi_reduction <add>, %8, %cst_7 [1] : vector<16x32xf32> to vector<16xf32>
    %10 = vector.shape_cast %9 : vector<16xf32> to vector<16x1xf32>
    %cst_8 = arith.constant 3.200000e+01 : f32
    %11 = vector.broadcast %cst_8 : f32 to vector<16x1xf32>
    %12 = arith.divf %10, %11 : vector<16x1xf32>
    %13 = arith.mulf %7, %7 : vector<16x1xf32>
    %14 = arith.subf %12, %13 : vector<16x1xf32>
    %cst_9 = arith.constant 0.000000e+00 : f32
    %15 = vector.broadcast %cst_9 : f32 to vector<16x1xf32>
    %16 = arith.maximumf %14, %15 : vector<16x1xf32>
    %17 = vector.broadcast %7 : vector<16x1xf32> to vector<16x32xf32>
    %18 = arith.subf %1, %17 : vector<16x32xf32>
    %cst_10 = arith.constant 9.99999974E-6 : f32
    %19 = vector.broadcast %cst_10 : f32 to vector<16x1xf32>
    %20 = arith.addf %16, %19 : vector<16x1xf32>
    %21 = math.rsqrt %20 : vector<16x1xf32>
    %22 = vector.broadcast %21 : vector<16x1xf32> to vector<16x32xf32>
    %23 = arith.mulf %18, %22 : vector<16x32xf32>
    %24 = vector.broadcast %2 : vector<1x32xf32> to vector<16x32xf32>
    %25 = arith.mulf %23, %24 : vector<16x32xf32>
    %26 = vector.broadcast %3 : vector<1x32xf32> to vector<16x32xf32>
    %27 = arith.addf %25, %26 : vector<16x32xf32>
    %c0_11 = arith.constant 0 : index
    %c0_12 = arith.constant 0 : index
    %28 = vector.load %arg4[%c0_11, %c0_12] : memref<32x96xf32, #tpu.memory_space<vmem>>, vector<32x96xf32>
    %cst_13 = arith.constant dense<0.000000e+00> : vector<16x96xf32>
    %29 = tpu.matmul %27, %28, %cst_13 {dimension_numbers = #tpu.dot_dimension_numbers<[1], [0], [0], [1], [0, 0, 1, 1], [], []>} : vector<16x32xf32>, vector<32x96xf32>, vector<16x96xf32> -> vector<16x96xf32>
    %c0_14 = arith.constant 0 : index
    %c0_15 = arith.constant 0 : index
    %30 = vector.load %arg5[%c0_14, %c0_15] : memref<1x96xf32, #tpu.memory_space<vmem>>, vector<1x96xf32>
    %31 = vector.broadcast %30 : vector<1x96xf32> to vector<16x96xf32>
    %32 = arith.addf %29, %31 : vector<16x96xf32>
    %33 = vector.shape_cast %32 : vector<16x96xf32> to vector<2x8x96xf32>
    %34 = vector.extract_strided_slice %33 {offsets = [0, 0, 0], sizes = [2, 8, 8], strides = [1, 1, 1]} : vector<2x8x96xf32> to vector<2x8x8xf32>
    %35 = vector.extract_strided_slice %33 {offsets = [0, 0, 32], sizes = [2, 8, 8], strides = [1, 1, 1]} : vector<2x8x96xf32> to vector<2x8x8xf32>
    %36 = vector.extract_strided_slice %33 {offsets = [0, 0, 64], sizes = [2, 8, 8], strides = [1, 1, 1]} : vector<2x8x96xf32> to vector<2x8x8xf32>
    "tpu.trace_start"() <{level = 10 : i32, message = "bnd,bmd->bnm"}> : () -> ()
    %cst_16 = arith.constant dense<0.000000e+00> : vector<2x8x8xf32>
    %37 = tpu.matmul %34, %35, %cst_16 {dimension_numbers = #tpu.dot_dimension_numbers<[2], [2], [1], [1], [0, 0, 0, 1, 1, 1], [0], [0]>} : vector<2x8x8xf32>, vector<2x8x8xf32>, vector<2x8x8xf32> -> vector<2x8x8xf32>
    "tpu.trace_stop"() : () -> ()
    %cst_17 = arith.constant dense<0xFF800000> : vector<2x8xf32>
    %38 = vector.multi_reduction <maximumf>, %37, %cst_17 [2] : vector<2x8x8xf32> to vector<2x8xf32>
    %39 = vector.shape_cast %38 : vector<2x8xf32> to vector<2x8x1xf32>
    %40 = vector.broadcast %39 : vector<2x8x1xf32> to vector<2x8x8xf32>
    %41 = arith.subf %37, %40 : vector<2x8x8xf32>
    %42 = math.exp %41 : vector<2x8x8xf32>
    %cst_18 = arith.constant dense<0.000000e+00> : vector<2x8xf32>
    %43 = vector.multi_reduction <add>, %42, %cst_18 [2] : vector<2x8x8xf32> to vector<2x8xf32>
    %44 = vector.shape_cast %43 : vector<2x8xf32> to vector<2x8x1xf32>
    %45 = tpu.reciprocal %44 {approx = true} : vector<2x8x1xf32> -> vector<2x8x1xf32>
    "tpu.trace_start"() <{level = 10 : i32, message = "bnm,bmd->bnd"}> : () -> ()
    %cst_19 = arith.constant dense<0.000000e+00> : vector<2x8x8xf32>
    %46 = tpu.matmul %42, %36, %cst_19 {dimension_numbers = #tpu.dot_dimension_numbers<[2], [1], [1], [2], [0, 0, 0, 1, 1, 2], [0], [0]>} : vector<2x8x8xf32>, vector<2x8x8xf32>, vector<2x8x8xf32> -> vector<2x8x8xf32>
    "tpu.trace_stop"() : () -> ()
    %47 = vector.broadcast %45 : vector<2x8x1xf32> to vector<2x8x8xf32>
    %48 = arith.mulf %46, %47 : vector<2x8x8xf32>
    %49 = vector.extract_strided_slice %33 {offsets = [0, 0, 8], sizes = [2, 8, 8], strides = [1, 1, 1]} : vector<2x8x96xf32> to vector<2x8x8xf32>
    %50 = vector.extract_strided_slice %33 {offsets = [0, 0, 40], sizes = [2, 8, 8], strides = [1, 1, 1]} : vector<2x8x96xf32> to vector<2x8x8xf32>
    %51 = vector.extract_strided_slice %33 {offsets = [0, 0, 72], sizes = [2, 8, 8], strides = [1, 1, 1]} : vector<2x8x96xf32> to vector<2x8x8xf32>
    "tpu.trace_start"() <{level = 10 : i32, message = "bnd,bmd->bnm"}> : () -> ()
    %cst_20 = arith.constant dense<0.000000e+00> : vector<2x8x8xf32>
    %52 = tpu.matmul %49, %50, %cst_20 {dimension_numbers = #tpu.dot_dimension_numbers<[2], [2], [1], [1], [0, 0, 0, 1, 1, 1], [0], [0]>} : vector<2x8x8xf32>, vector<2x8x8xf32>, vector<2x8x8xf32> -> vector<2x8x8xf32>
    "tpu.trace_stop"() : () -> ()
    %cst_21 = arith.constant dense<0xFF800000> : vector<2x8xf32>
    %53 = vector.multi_reduction <maximumf>, %52, %cst_21 [2] : vector<2x8x8xf32> to vector<2x8xf32>
    %54 = vector.shape_cast %53 : vector<2x8xf32> to vector<2x8x1xf32>
    %55 = vector.broadcast %54 : vector<2x8x1xf32> to vector<2x8x8xf32>
    %56 = arith.subf %52, %55 : vector<2x8x8xf32>
    %57 = math.exp %56 : vector<2x8x8xf32>
    %cst_22 = arith.constant dense<0.000000e+00> : vector<2x8xf32>
    %58 = vector.multi_reduction <add>, %57, %cst_22 [2] : vector<2x8x8xf32> to vector<2x8xf32>
    %59 = vector.shape_cast %58 : vector<2x8xf32> to vector<2x8x1xf32>
    %60 = tpu.reciprocal %59 {approx = true} : vector<2x8x1xf32> -> vector<2x8x1xf32>
    "tpu.trace_start"() <{level = 10 : i32, message = "bnm,bmd->bnd"}> : () -> ()
    %cst_23 = arith.constant dense<0.000000e+00> : vector<2x8x8xf32>
    %61 = tpu.matmul %57, %51, %cst_23 {dimension_numbers = #tpu.dot_dimension_numbers<[2], [1], [1], [2], [0, 0, 0, 1, 1, 2], [0], [0]>} : vector<2x8x8xf32>, vector<2x8x8xf32>, vector<2x8x8xf32> -> vector<2x8x8xf32>
    "tpu.trace_stop"() : () -> ()
    %62 = vector.broadcast %60 : vector<2x8x1xf32> to vector<2x8x8xf32>
    %63 = arith.mulf %61, %62 : vector<2x8x8xf32>
    %64 = vector.extract_strided_slice %33 {offsets = [0, 0, 16], sizes = [2, 8, 8], strides = [1, 1, 1]} : vector<2x8x96xf32> to vector<2x8x8xf32>
    %65 = vector.extract_strided_slice %33 {offsets = [0, 0, 48], sizes = [2, 8, 8], strides = [1, 1, 1]} : vector<2x8x96xf32> to vector<2x8x8xf32>
    %66 = vector.extract_strided_slice %33 {offsets = [0, 0, 80], sizes = [2, 8, 8], strides = [1, 1, 1]} : vector<2x8x96xf32> to vector<2x8x8xf32>
    "tpu.trace_start"() <{level = 10 : i32, message = "bnd,bmd->bnm"}> : () -> ()
    %cst_24 = arith.constant dense<0.000000e+00> : vector<2x8x8xf32>
    %67 = tpu.matmul %64, %65, %cst_24 {dimension_numbers = #tpu.dot_dimension_numbers<[2], [2], [1], [1], [0, 0, 0, 1, 1, 1], [0], [0]>} : vector<2x8x8xf32>, vector<2x8x8xf32>, vector<2x8x8xf32> -> vector<2x8x8xf32>
    "tpu.trace_stop"() : () -> ()
    %cst_25 = arith.constant dense<0xFF800000> : vector<2x8xf32>
    %68 = vector.multi_reduction <maximumf>, %67, %cst_25 [2] : vector<2x8x8xf32> to vector<2x8xf32>
    %69 = vector.shape_cast %68 : vector<2x8xf32> to vector<2x8x1xf32>
    %70 = vector.broadcast %69 : vector<2x8x1xf32> to vector<2x8x8xf32>
    %71 = arith.subf %67, %70 : vector<2x8x8xf32>
    %72 = math.exp %71 : vector<2x8x8xf32>
    %cst_26 = arith.constant dense<0.000000e+00> : vector<2x8xf32>
    %73 = vector.multi_reduction <add>, %72, %cst_26 [2] : vector<2x8x8xf32> to vector<2x8xf32>
    %74 = vector.shape_cast %73 : vector<2x8xf32> to vector<2x8x1xf32>
    %75 = tpu.reciprocal %74 {approx = true} : vector<2x8x1xf32> -> vector<2x8x1xf32>
    "tpu.trace_start"() <{level = 10 : i32, message = "bnm,bmd->bnd"}> : () -> ()
    %cst_27 = arith.constant dense<0.000000e+00> : vector<2x8x8xf32>
    %76 = tpu.matmul %72, %66, %cst_27 {dimension_numbers = #tpu.dot_dimension_numbers<[2], [1], [1], [2], [0, 0, 0, 1, 1, 2], [0], [0]>} : vector<2x8x8xf32>, vector<2x8x8xf32>, vector<2x8x8xf32> -> vector<2x8x8xf32>
    "tpu.trace_stop"() : () -> ()
    %77 = vector.broadcast %75 : vector<2x8x1xf32> to vector<2x8x8xf32>
    %78 = arith.mulf %76, %77 : vector<2x8x8xf32>
    %79 = vector.extract_strided_slice %33 {offsets = [0, 0, 24], sizes = [2, 8, 8], strides = [1, 1, 1]} : vector<2x8x96xf32> to vector<2x8x8xf32>
    %80 = vector.extract_strided_slice %33 {offsets = [0, 0, 56], sizes = [2, 8, 8], strides = [1, 1, 1]} : vector<2x8x96xf32> to vector<2x8x8xf32>
    %81 = vector.extract_strided_slice %33 {offsets = [0, 0, 88], sizes = [2, 8, 8], strides = [1, 1, 1]} : vector<2x8x96xf32> to vector<2x8x8xf32>
    "tpu.trace_start"() <{level = 10 : i32, message = "bnd,bmd->bnm"}> : () -> ()
    %cst_28 = arith.constant dense<0.000000e+00> : vector<2x8x8xf32>
    %82 = tpu.matmul %79, %80, %cst_28 {dimension_numbers = #tpu.dot_dimension_numbers<[2], [2], [1], [1], [0, 0, 0, 1, 1, 1], [0], [0]>} : vector<2x8x8xf32>, vector<2x8x8xf32>, vector<2x8x8xf32> -> vector<2x8x8xf32>
    "tpu.trace_stop"() : () -> ()
    %cst_29 = arith.constant dense<0xFF800000> : vector<2x8xf32>
    %83 = vector.multi_reduction <maximumf>, %82, %cst_29 [2] : vector<2x8x8xf32> to vector<2x8xf32>
    %84 = vector.shape_cast %83 : vector<2x8xf32> to vector<2x8x1xf32>
    %85 = vector.broadcast %84 : vector<2x8x1xf32> to vector<2x8x8xf32>
    %86 = arith.subf %82, %85 : vector<2x8x8xf32>
    %87 = math.exp %86 : vector<2x8x8xf32>
    %cst_30 = arith.constant dense<0.000000e+00> : vector<2x8xf32>
    %88 = vector.multi_reduction <add>, %87, %cst_30 [2] : vector<2x8x8xf32> to vector<2x8xf32>
    %89 = vector.shape_cast %88 : vector<2x8xf32> to vector<2x8x1xf32>
    %90 = tpu.reciprocal %89 {approx = true} : vector<2x8x1xf32> -> vector<2x8x1xf32>
    "tpu.trace_start"() <{level = 10 : i32, message = "bnm,bmd->bnd"}> : () -> ()
    %cst_31 = arith.constant dense<0.000000e+00> : vector<2x8x8xf32>
    %91 = tpu.matmul %87, %81, %cst_31 {dimension_numbers = #tpu.dot_dimension_numbers<[2], [1], [1], [2], [0, 0, 0, 1, 1, 2], [0], [0]>} : vector<2x8x8xf32>, vector<2x8x8xf32>, vector<2x8x8xf32> -> vector<2x8x8xf32>
    "tpu.trace_stop"() : () -> ()
    %92 = vector.broadcast %90 : vector<2x8x1xf32> to vector<2x8x8xf32>
    %93 = arith.mulf %91, %92 : vector<2x8x8xf32>
    %94 = tpu.concatenate %48, %63, %78, %93 in 2 : vector<2x8x8xf32>, vector<2x8x8xf32>, vector<2x8x8xf32>, vector<2x8x8xf32> -> vector<2x8x32xf32>
    %95 = vector.shape_cast %94 : vector<2x8x32xf32> to vector<16x32xf32>
    %c0_32 = arith.constant 0 : index
    %c0_33 = arith.constant 0 : index
    %96 = vector.load %arg6[%c0_32, %c0_33] : memref<32x32xf32, #tpu.memory_space<vmem>>, vector<32x32xf32>
    %cst_34 = arith.constant dense<0.000000e+00> : vector<16x32xf32>
    %97 = tpu.matmul %95, %96, %cst_34 {dimension_numbers = #tpu.dot_dimension_numbers<[1], [0], [0], [1], [0, 0, 1, 1], [], []>} : vector<16x32xf32>, vector<32x32xf32>, vector<16x32xf32> -> vector<16x32xf32>
    %c0_35 = arith.constant 0 : index
    %c0_36 = arith.constant 0 : index
    %98 = vector.load %arg7[%c0_35, %c0_36] : memref<1x32xf32, #tpu.memory_space<vmem>>, vector<1x32xf32>
    %99 = vector.broadcast %98 : vector<1x32xf32> to vector<16x32xf32>
    %100 = arith.addf %97, %99 : vector<16x32xf32>
    %101 = arith.addf %1, %100 : vector<16x32xf32>
    %c0_37 = arith.constant 0 : index
    %c0_38 = arith.constant 0 : index
    %102 = vector.load %arg8[%c0_37, %c0_38] : memref<1x32xf32, #tpu.memory_space<vmem>>, vector<1x32xf32>
    %c0_39 = arith.constant 0 : index
    %c0_40 = arith.constant 0 : index
    %103 = vector.load %arg9[%c0_39, %c0_40] : memref<1x32xf32, #tpu.memory_space<vmem>>, vector<1x32xf32>
    %cst_41 = arith.constant dense<0.000000e+00> : vector<16xf32>
    %104 = vector.multi_reduction <add>, %101, %cst_41 [1] : vector<16x32xf32> to vector<16xf32>
    %105 = vector.shape_cast %104 : vector<16xf32> to vector<16x1xf32>
    %cst_42 = arith.constant 3.200000e+01 : f32
    %106 = vector.broadcast %cst_42 : f32 to vector<16x1xf32>
    %107 = arith.divf %105, %106 : vector<16x1xf32>
    %108 = arith.mulf %101, %101 : vector<16x32xf32>
    %cst_43 = arith.constant dense<0.000000e+00> : vector<16xf32>
    %109 = vector.multi_reduction <add>, %108, %cst_43 [1] : vector<16x32xf32> to vector<16xf32>
    %110 = vector.shape_cast %109 : vector<16xf32> to vector<16x1xf32>
    %cst_44 = arith.constant 3.200000e+01 : f32
    %111 = vector.broadcast %cst_44 : f32 to vector<16x1xf32>
    %112 = arith.divf %110, %111 : vector<16x1xf32>
    %113 = arith.mulf %107, %107 : vector<16x1xf32>
    %114 = arith.subf %112, %113 : vector<16x1xf32>
    %cst_45 = arith.constant 0.000000e+00 : f32
    %115 = vector.broadcast %cst_45 : f32 to vector<16x1xf32>
    %116 = arith.maximumf %114, %115 : vector<16x1xf32>
    %117 = vector.broadcast %107 : vector<16x1xf32> to vector<16x32xf32>
    %118 = arith.subf %101, %117 : vector<16x32xf32>
    %cst_46 = arith.constant 9.99999974E-6 : f32
    %119 = vector.broadcast %cst_46 : f32 to vector<16x1xf32>
    %120 = arith.addf %116, %119 : vector<16x1xf32>
    %121 = math.rsqrt %120 : vector<16x1xf32>
    %122 = vector.broadcast %121 : vector<16x1xf32> to vector<16x32xf32>
    %123 = arith.mulf %118, %122 : vector<16x32xf32>
    %124 = vector.broadcast %102 : vector<1x32xf32> to vector<16x32xf32>
    %125 = arith.mulf %123, %124 : vector<16x32xf32>
    %126 = vector.broadcast %103 : vector<1x32xf32> to vector<16x32xf32>
    %127 = arith.addf %125, %126 : vector<16x32xf32>
    %c0_47 = arith.constant 0 : index
    %c0_48 = arith.constant 0 : index
    %128 = vector.load %arg10[%c0_47, %c0_48] : memref<32x32xf32, #tpu.memory_space<vmem>>, vector<32x32xf32>
    %cst_49 = arith.constant dense<0.000000e+00> : vector<16x32xf32>
    %129 = tpu.matmul %127, %128, %cst_49 {dimension_numbers = #tpu.dot_dimension_numbers<[1], [0], [0], [1], [0, 0, 1, 1], [], []>} : vector<16x32xf32>, vector<32x32xf32>, vector<16x32xf32> -> vector<16x32xf32>
    %c0_50 = arith.constant 0 : index
    %c0_51 = arith.constant 0 : index
    %130 = vector.load %arg11[%c0_50, %c0_51] : memref<1x32xf32, #tpu.memory_space<vmem>>, vector<1x32xf32>
    %131 = vector.broadcast %130 : vector<1x32xf32> to vector<16x32xf32>
    %132 = arith.addf %129, %131 : vector<16x32xf32>
    %cst_52 = arith.constant 5.000000e-01 : f32
    %133 = vector.broadcast %cst_52 : f32 to vector<16x32xf32>
    %134 = arith.mulf %133, %132 : vector<16x32xf32>
    %cst_53 = arith.constant 0.707106769 : f32
    %135 = vector.broadcast %cst_53 : f32 to vector<16x32xf32>
    %136 = arith.mulf %132, %135 : vector<16x32xf32>
    %cst_54 = arith.constant 0.000000e+00 : f32
    %137 = vector.broadcast %cst_54 : f32 to vector<16x32xf32>
    %138 = arith.cmpf oge, %136, %137 : vector<16x32xf32>
    %cst_55 = arith.constant 1.000000e+00 : f32
    %cst_56 = arith.constant -1.000000e+00 : f32
    %139 = vector.broadcast %cst_55 : f32 to vector<16x32xf32>
    %140 = vector.broadcast %cst_56 : f32 to vector<16x32xf32>
    %141 = arith.select %138, %139, %140 : vector<16x32xi1>, vector<16x32xf32>
    %142 = math.absf %136 : vector<16x32xf32>
    %cst_57 = arith.constant 0.327591091 : f32
    %143 = vector.broadcast %cst_57 : f32 to vector<16x32xf32>
    %144 = arith.mulf %143, %142 : vector<16x32xf32>
    %cst_58 = arith.constant 1.000000e+00 : f32
    %145 = vector.broadcast %cst_58 : f32 to vector<16x32xf32>
    %146 = arith.addf %145, %144 : vector<16x32xf32>
    %cst_59 = arith.constant 1.000000e+00 : f32
    %147 = vector.broadcast %cst_59 : f32 to vector<16x32xf32>
    %148 = arith.divf %147, %146 : vector<16x32xf32>
    %cst_60 = arith.constant 1.06140542 : f32
    %149 = vector.broadcast %cst_60 : f32 to vector<16x32xf32>
    %150 = arith.mulf %149, %148 : vector<16x32xf32>
    %cst_61 = arith.constant -1.45315206 : f32
    %151 = vector.broadcast %cst_61 : f32 to vector<16x32xf32>
    %152 = arith.addf %150, %151 : vector<16x32xf32>
    %153 = arith.mulf %152, %148 : vector<16x32xf32>
    %cst_62 = arith.constant 1.42141378 : f32
    %154 = vector.broadcast %cst_62 : f32 to vector<16x32xf32>
    %155 = arith.addf %153, %154 : vector<16x32xf32>
    %156 = arith.mulf %155, %148 : vector<16x32xf32>
    %cst_63 = arith.constant -0.284496725 : f32
    %157 = vector.broadcast %cst_63 : f32 to vector<16x32xf32>
    %158 = arith.addf %156, %157 : vector<16x32xf32>
    %159 = arith.mulf %158, %148 : vector<16x32xf32>
    %cst_64 = arith.constant 0.254829586 : f32
    %160 = vector.broadcast %cst_64 : f32 to vector<16x32xf32>
    %161 = arith.addf %159, %160 : vector<16x32xf32>
    %162 = arith.mulf %161, %148 : vector<16x32xf32>
    %cst_65 = arith.constant 0.000000e+00 : f32
    %163 = vector.broadcast %cst_65 : f32 to vector<16x32xf32>
    %164 = arith.subf %163, %142 : vector<16x32xf32>
    %165 = arith.mulf %164, %142 : vector<16x32xf32>
    %166 = math.exp %165 : vector<16x32xf32>
    %167 = arith.mulf %162, %166 : vector<16x32xf32>
    %cst_66 = arith.constant 1.000000e+00 : f32
    %168 = vector.broadcast %cst_66 : f32 to vector<16x32xf32>
    %169 = arith.subf %168, %167 : vector<16x32xf32>
    %170 = arith.mulf %141, %169 : vector<16x32xf32>
    %cst_67 = arith.constant 1.000000e+00 : f32
    %171 = vector.broadcast %cst_67 : f32 to vector<16x32xf32>
    %172 = arith.addf %171, %170 : vector<16x32xf32>
    %173 = arith.mulf %134, %172 : vector<16x32xf32>
    %c0_68 = arith.constant 0 : index
    %c0_69 = arith.constant 0 : index
    %174 = vector.load %arg12[%c0_68, %c0_69] : memref<32x32xf32, #tpu.memory_space<vmem>>, vector<32x32xf32>
    %cst_70 = arith.constant dense<0.000000e+00> : vector<16x32xf32>
    %175 = tpu.matmul %173, %174, %cst_70 {dimension_numbers = #tpu.dot_dimension_numbers<[1], [0], [0], [1], [0, 0, 1, 1], [], []>} : vector<16x32xf32>, vector<32x32xf32>, vector<16x32xf32> -> vector<16x32xf32>
    %c0_71 = arith.constant 0 : index
    %c0_72 = arith.constant 0 : index
    %176 = vector.load %arg13[%c0_71, %c0_72] : memref<1x32xf32, #tpu.memory_space<vmem>>, vector<1x32xf32>
    %177 = vector.broadcast %176 : vector<1x32xf32> to vector<16x32xf32>
    %178 = arith.addf %175, %177 : vector<16x32xf32>
    %179 = arith.addf %101, %178 : vector<16x32xf32>
    %180 = vector.shape_cast %179 : vector<16x32xf32> to vector<2x8x32xf32>
    %c0_73 = arith.constant 0 : index
    %c0_74 = arith.constant 0 : index
    %c0_75 = arith.constant 0 : index
    %181 = vector.load %arg14[%c0_73, %c0_74, %c0_75] : memref<2x8x32xf32, #tpu.memory_space<vmem>>, vector<2x8x32xf32>
    tpu.vector_store %arg14[%c0_73, %c0_74, %c0_75], %180 {strides = array<i32>} : memref<2x8x32xf32, #tpu.memory_space<vmem>>, vector<2x8x32xf32>,
    return
  }
  func.func @transform_0(%arg0: i32) -> (i32, i32, i32) {
    %c0_i32 = arith.constant 0 : i32
    %c0_i32_0 = arith.constant 0 : i32
    %c0_i32_1 = arith.constant 0 : i32
    %c0_i32_2 = arith.constant 0 : i32
    return %c0_i32, %c0_i32_0, %c0_i32_1 : i32, i32, i32
  }
  func.func @transform_1(%arg0: i32) -> (i32, i32) {
    %c0_i32 = arith.constant 0 : i32
    %c0_i32_0 = arith.constant 0 : i32
    %c0_i32_1 = arith.constant 0 : i32
    return %c0_i32, %c0_i32_0 : i32, i32
  }
  func.func @transform_2(%arg0: i32) -> (i32, i32) {
    %c0_i32 = arith.constant 0 : i32
    %c0_i32_0 = arith.constant 0 : i32
    %c0_i32_1 = arith.constant 0 : i32
    return %c0_i32, %c0_i32_0 : i32, i32
  }
  func.func @transform_3(%arg0: i32) -> (i32, i32) {
    %c0_i32 = arith.constant 0 : i32
    %c0_i32_0 = arith.constant 0 : i32
    %c0_i32_1 = arith.constant 0 : i32
    return %c0_i32, %c0_i32_0 : i32, i32
  }
  func.func @transform_4(%arg0: i32) -> (i32, i32) {
    %c0_i32 = arith.constant 0 : i32
    %c0_i32_0 = arith.constant 0 : i32
    %c0_i32_1 = arith.constant 0 : i32
    return %c0_i32, %c0_i32_0 : i32, i32
  }
  func.func @transform_5(%arg0: i32) -> (i32, i32) {
    %c0_i32 = arith.constant 0 : i32
    %c0_i32_0 = arith.constant 0 : i32
    %c0_i32_1 = arith.constant 0 : i32
    return %c0_i32, %c0_i32_0 : i32, i32
  }
  func.func @transform_6(%arg0: i32) -> (i32, i32) {
    %c0_i32 = arith.constant 0 : i32
    %c0_i32_0 = arith.constant 0 : i32
    %c0_i32_1 = arith.constant 0 : i32
    return %c0_i32, %c0_i32_0 : i32, i32
  }
  func.func @transform_7(%arg0: i32) -> (i32, i32) {
    %c0_i32 = arith.constant 0 : i32
    %c0_i32_0 = arith.constant 0 : i32
    %c0_i32_1 = arith.constant 0 : i32
    return %c0_i32, %c0_i32_0 : i32, i32
  }
  func.func @transform_8(%arg0: i32) -> (i32, i32) {
    %c0_i32 = arith.constant 0 : i32
    %c0_i32_0 = arith.constant 0 : i32
    %c0_i32_1 = arith.constant 0 : i32
    return %c0_i32, %c0_i32_0 : i32, i32
  }
  func.func @transform_9(%arg0: i32) -> (i32, i32) {
    %c0_i32 = arith.constant 0 : i32
    %c0_i32_0 = arith.constant 0 : i32
    %c0_i32_1 = arith.constant 0 : i32
    return %c0_i32, %c0_i32_0 : i32, i32
  }
  func.func @transform_10(%arg0: i32) -> (i32, i32) {
    %c0_i32 = arith.constant 0 : i32
    %c0_i32_0 = arith.constant 0 : i32
    %c0_i32_1 = arith.constant 0 : i32
    return %c0_i32, %c0_i32_0 : i32, i32
  }
  func.func @transform_11(%arg0: i32) -> (i32, i32) {
    %c0_i32 = arith.constant 0 : i32
    %c0_i32_0 = arith.constant 0 : i32
    %c0_i32_1 = arith.constant 0 : i32
    return %c0_i32, %c0_i32_0 : i32, i32
  }
  func.func @transform_12(%arg0: i32) -> (i32, i32) {
    %c0_i32 = arith.constant 0 : i32
    %c0_i32_0 = arith.constant 0 : i32
    %c0_i32_1 = arith.constant 0 : i32
    return %c0_i32, %c0_i32_0 : i32, i32
  }
  func.func @transform_13(%arg0: i32) -> (i32, i32, i32) {
    %c0_i32 = arith.constant 0 : i32
    %c0_i32_0 = arith.constant 0 : i32
    %c0_i32_1 = arith.constant 0 : i32
    %c0_i32_2 = arith.constant 0 : i32
    return %c0_i32, %c0_i32_0, %c0_i32_1 : i32, i32, i32
  }
}

</mosaic_0001>

<bundles_post_ra>
// kernel: tpu_custom_call.1
= control target key start
LH: loop header
LB: loop body
LE: loop exit
PB: predicated region body
PF: predicated region fallthrough
CT: control target
= control target key end

     0   :  { %18 = vsyncpa [#allocation3], 0  ;;  %s1688_s0 = inlined_call_operand.hbm [shape: f32[2,8,32], index: 0, kind: input, shape index: {}]   ;;  %s1689_s1 = inlined_call_operand.hbm [shape: f32[1,32], index: 1, kind: input, shape index: {}]   ;;  %s1690_s2 = inlined_call_operand.vmem [shape: f32[1,32], index: 2, kind: input, shape index: {}]   ;;  %s1691_s3 = inlined_call_operand.hbm [shape: f32[32,96], index: 3, kind: input, shape index: {}]   ;;  %s1692_s4 = inlined_call_operand.vmem [shape: f32[1,96], index: 4, kind: input, shape index: {}]   ;;  %s1693_s5 = inlined_call_operand.hbm [shape: f32[32,32], index: 5, kind: input, shape index: {}]   ;;  %s1694_s6 = inlined_call_operand.vmem [shape: f32[1,32], index: 6, kind: input, shape index: {}]   ;;  %s1695_s7 = inlined_call_operand.vmem [shape: f32[1,32], index: 7, kind: input, shape index: {}]   ;;  %s1696_s8 = inlined_call_operand.vmem [shape: f32[1,32], index: 8, kind: input, shape index: {}]   ;;  %s1697_s9 = inlined_call_operand.hbm [shape: f32[32,32], index: 9, kind: input, shape index: {}]   ;;  %s1698_s10 = inlined_call_operand.vmem [shape: f32[1,32], index: 10, kind: input, shape index: {}]   ;;  %s1699_s11 = inlined_call_operand.hbm [shape: f32[32,32], index: 11, kind: input, shape index: {}]   ;;  %s1700_s12 = inlined_call_operand.vmem [shape: f32[1,32], index: 12, kind: input, shape index: {}]   ;;  %s1701_s13 = inlined_call_operand.hbm [shape: f32[2,8,32], index: 13, kind: output, shape index: {}]  }
   0x1   :  { %19 = vsyncpa [#allocation6], 0 }
   0x2   :  { %20 = vsyncpa [#allocation9], 0 }
   0x3   :  { %21 = vsyncpa [#allocation12], 0  ;;  %s41_s27 = sshll.u32 %s1689_s1, 4  ;;  %s42_s27 = int_to_ptr.hbm [resolvable:$true] %s41_s27 }
   0x4   :  { %22 = vsyncpa [#allocation4], 0  ;;  %s1375_s28 = smov [#allocation5]   ;;  %s68_s15 = sshll.u32 %s1693_s5, 4  ;;  %s69_s15 = int_to_ptr.hbm [resolvable:$true] %s68_s15 }
   0x5   :  { %s43_s29 = sshll.u32 %s1375_s28, 4  ;;  %s1376_s16 = smov [#allocation8]   ;;  %s44_s29 = int_to_ptr.vmem [resolvable:$true] %s43_s29 }
   0x6   :  { %46 = dma.hbm_to_vmem [thread:$0]  %s42_s27, 16, %s44_s29, [#allocation6]  }
   0x7   :  { %s70_s17 = sshll.u32 %s1376_s16, 4  ;;  %s27_s20 = sshll.u32 %s1688_s0, 4  ;;  %s71_s17 = int_to_ptr.vmem [resolvable:$true] %s70_s17  ;;  %s28_s20 = int_to_ptr.hbm [resolvable:$true] %s27_s20 }
   0x8   :  { %s1377_s1 = smov 128   ;;  %s1378_s21 = smov 8  }
   0x9   :  { %76 = dma.hbm_to_vmem [thread:$0]  %s69_s15, 512, %s71_s17, [#allocation9], %s1377_s1, %s1377_s1, %s1378_s21  }
   0xa   :  { %s53_s24 = sshll.u32 %s1691_s3, 4  ;;  %s1379_s5 = smov [#allocation2]   ;;  %s54_s24 = int_to_ptr.hbm [resolvable:$true] %s53_s24 }
   0xb   :  { %s29_s25 = sshll.u32 %s1379_s5, 4  ;;  %s1380_s0 = smov [#allocation7]   ;;  %s30_s25 = int_to_ptr.vmem [resolvable:$true] %s29_s25 }
   0xc   :  { %35 = dma.hbm_to_vmem [thread:$0]  %s28_s20, 256, %s30_s25, [#allocation3], %s1377_s1, %s1377_s1, %s1378_s21  }
   0xd   :  { %s55_s26 = sshll.u32 %s1380_s0, 4  ;;  %s87_s29 = sshll.u32 %s1697_s9, 4  ;;  %s56_s26 = int_to_ptr.vmem [resolvable:$true] %s55_s26  ;;  %s88_s29 = int_to_ptr.hbm [resolvable:$true] %s87_s29 }
   0xe   :  { %61 = dma.hbm_to_vmem [thread:$0]  %s54_s24, 512, %s56_s26, [#allocation6], %s1377_s1, %s1377_s1, %s1378_s21  }
   0xf   :  { %s102_s14 = sshll.u32 %s1699_s11, 4  ;;  %s1381_s15 = smov [#allocation10]   ;;  %s103_s14 = int_to_ptr.hbm [resolvable:$true] %s102_s14 }
  0x10   :  { %s89_s16 = sshll.u32 %s1381_s15, 4  ;;  %s1382_s17 = smov [#allocation11]   ;;  %s90_s16 = int_to_ptr.vmem [resolvable:$true] %s89_s16 }
  0x11   :  { %95 = dma.hbm_to_vmem [thread:$0]  %s88_s29, 512, %s90_s16, [#allocation9], %s1377_s1, %s1377_s1, %s1378_s21  }
  0x12   :  { %s104_s9 = sshll.u32 %s1382_s17, 4  ;;  %s105_s9 = int_to_ptr.vmem [resolvable:$true] %s104_s9 }
  0x13   :  { %110 = dma.hbm_to_vmem [thread:$0]  %s103_s14, 512, %s105_s9, [#allocation12], %s1377_s1, %s1377_s1, %s1378_s21  }
  0x14   :  { %1365 = dma.done.wait [#allocation3], 256  }
  0x15   :  { %1366 = vsyncadd [#allocation3], 4294967040 }
  0x16   :  { %1367 = dma.done.wait [#allocation6], 528  }
  0x17   :  { %1368 = vsyncadd [#allocation6], 4294966768 }
  0x18   :  { %1369 = dma.done.wait [#allocation9], 1024  }
  0x19   :  { %1370 = vsyncadd [#allocation9], 4294966272 }
  0x1a   :  { %1371 = dma.done.wait [#allocation12], 512  }
  0x1b   :  { %1372 = vsyncadd [#allocation12], 4294966784  ;;  %vm141_vm0 = vcmask 261120   ;;  %v1502_v0 = vld [vmem:[#allocation2] sm:$0xff]  ;;  %v1504_v1 = vld [vmem:[#allocation2 + $0x8] sm:$0xff]  ;;  %v1383_v8 = vmov 32.0  }
  0x1c   :  { %v142_v2 = vsel %vm141_vm0, %v1502_v0, 0.0  ;;  %v145_v3 = vsel %vm141_vm0, %v1504_v1, 0.0  ;;  %v157_v4 = vmul.f32 %v1502_v0, %v1502_v0  ;;  %v158_v5 = vmul.f32 %v1504_v1, %v1504_v1  ;;  %v212_v16 = vld [vmem:[#allocation7 + $0x18] sm:$0xff]  ;;  %v211_v17 = vld [vmem:[#allocation7 + $0x10] sm:$0xff]  ;;  %v210_v20 = vld [vmem:[#allocation7 + $0x8] sm:$0xff]  ;;  %s1384_s22 = smov 64  }
  0x1d   :  { %143 = vadd.xlane.f32.xlu0 %v142_v2  ;;  %146 = vadd.xlane.f32.xlu1 %v145_v3  ;;  %1147 = vrcp.f32 %v1383_v8  ;;  %v209_v22 = vld [vmem:[#allocation7] sm:$0xff]  ;;  %v1139_v49 = vld [vmem:[#allocation5] ss:$0 sm:$0xff]  ;;  %v1140_v52 = vld [vmem:[%s1690_s2] ss:$0 sm:$0xff]  ;;  %s1385_s2 = smov 96  }
  0x1e   :  { %v159_v6 = vsel %vm141_vm0, %v157_v4, 0.0  ;;  %v162_v7 = vsel %vm141_vm0, %v158_v5, 0.0  ;;  %235 = vmatpush.msra.mxu0 %v212_v16  ;;  %v1141_v59 = vld [vmem:[%s1692_s4] ss:$0 sm:$0xff]  ;;  %s1386_s23 = smov 120   ;;  %s1387_s4 = smov 88  }
  0x1f   :  { %s1388_s24 = smov 80   ;;  %s1389_s5 = smov 72   ;;  %vm249_vm8 = vcmask 64512   ;;  %vm791_vm9 = vcmask 130048   ;;  %vm794_vm10 = vcmask 195584  }
  0x20   :  { %236 = vmatpush.msra.mxu0 %v211_v17  ;;  %s1390_s25 = smov 112   ;;  %s1391_s0 = smov 104  }
  0x21   :  { %s1392_s26 = smov 56   ;;  %s1393_s27 = smov 40  }
  0x22   :  { %237 = vmatpush.msra.mxu0 %v210_v20  ;;  %s1394_s28 = smov 48   ;;  %s1395_s29 = smov 16  }
  0x23   :  { %v1148_v9 = vpop.eup %1147  ;;  %s1396_s3 = smov 24   ;;  %s1398_s11 = smov [#allocation13]  }
  0x24   :  { %v149_v10 = vmul.f32 32.0, %v1148_v9  ;;  %vm153_vm1 = vweird.f32 %v1148_v9  ;;  %238 = vmatpush.msra.mxu0 %v209_v22  ;;  %s1060_s18 = sshll.u32 %s1398_s11, 4  ;;  %s1061_s18 = int_to_ptr.vmem [resolvable:$true] %s1060_s18 }
  0x25   :  { %160 = vadd.xlane.f32.xlu0 %v159_v6  ;;  %163 = vadd.xlane.f32.xlu1 %v162_v7 }
  0x26   :  { %v150_v11 = vsub.f32 1.0, %v149_v10 }
  0x28   :  { %v151_v12 = vmul.f32 %v1148_v9, %v150_v11 }
  0x2a   :  { %v152_v13 = vadd.f32 %v1148_v9, %v151_v12 }
  0x2c   :  { %v1516_v18 = vsel %vm153_vm1, %v1148_v9, %v152_v13 }
  0x90   :  { %v144_v14 = vpop.xlane.xlu0 %143  ;;  %v147_v15 = vpop.xlane.xlu1 %146 }
  0x91   :  { %v156_v19 = vmul.f32 %v1516_v18, %v147_v15  ;;  %v155_v21 = vmul.f32 %v1516_v18, %v144_v14 }
  0x93   :  { %v168_v23 = vmul.f32 %v156_v19, %v156_v19  ;;  %v167_v26 = vmul.f32 %v155_v21, %v155_v21  ;;  %v173_v46 = vsub.f32 %v1502_v0, %v155_v21  ;;  %v174_v47 = vsub.f32 %v1504_v1, %v156_v19 }
  0x98   :  { %v161_v24 = vpop.xlane.xlu0 %160  ;;  %v164_v25 = vpop.xlane.xlu1 %163 }
  0x99   :  { %v165_v27 = vmul.f32 %v161_v24, %v1516_v18  ;;  %v166_v28 = vmul.f32 %v164_v25, %v1516_v18 }
  0x9b   :  { %v169_v29 = vsub.f32 %v165_v27, %v167_v26  ;;  %v170_v30 = vsub.f32 %v166_v28, %v168_v23 }
  0x9d   :  { %v171_v31 = vmax.f32 %v169_v29, 0.0  ;;  %v172_v32 = vmax.f32 %v170_v30, 0.0 }
  0x9f   :  { %v175_v33 = vadd.f32 1e-05, %v171_v31  ;;  %v176_v34 = vadd.f32 1e-05, %v172_v32 }
  0xa1   :  { %1149 = vrsqrt.f32 %v175_v33  ;;  %vm193_vm2 = vweird.f32 %v176_v34  ;;  %vm183_vm5 = vweird.f32 %v175_v33 }
  0xa2   :  { %1151 = vrsqrt.f32 %v176_v34 }
  0xa7   :  { %v1150_v35 = vpop.eup %1149 }
  0xa8   :  { %v1152_v36 = vpop.eup %1151  ;;  %v178_v37 = vmul.f32 %v1150_v35, %v175_v33  ;;  %vm184_vm4 = vweird.f32 %v1150_v35 }
  0xa9   :  { %v188_v38 = vmul.f32 %v1152_v36, %v176_v34  ;;  %vm194_vm3 = vweird.f32 %v1152_v36  ;;  %vm185_vm7 = vmor %vm183_vm5, %vm184_vm4 }
  0xaa   :  { %v179_v39 = vmul.f32 %v1150_v35, %v178_v37  ;;  %vm195_vm6 = vmor %vm193_vm2, %vm194_vm3 }
  0xab   :  { %v189_v40 = vmul.f32 %v1152_v36, %v188_v38 }
  0xac   :  { %v180_v41 = vmul.f32 0.5, %v179_v39 }
  0xad   :  { %v190_v42 = vmul.f32 0.5, %v189_v40 }
  0xae   :  { %v181_v43 = vsub.f32 1.5, %v180_v41 }
  0xaf   :  { %v191_v44 = vsub.f32 1.5, %v190_v42 }
  0xb0   :  { %v182_v45 = vmul.f32 %v1150_v35, %v181_v43 }
  0xb1   :  { %v192_v48 = vmul.f32 %v1152_v36, %v191_v44 }
  0xb2   :  { %v186_v50 = vsel %vm185_vm7, %v1150_v35, %v182_v45 }
  0xb3   :  { %v197_v51 = vmul.f32 %v186_v50, %v173_v46  ;;  %v196_v53 = vsel %vm195_vm6, %v1152_v36, %v192_v48 }
  0xb4   :  { %v198_v55 = vmul.f32 %v196_v53, %v174_v47 }
  0xb5   :  { %v202_v54 = vmul.f32 %v1139_v49, %v197_v51 }
  0xb6   :  { %v203_v57 = vmul.f32 %v1139_v49, %v198_v55 }
  0xb7   :  { %v207_v56 = vadd.f32 %v1140_v52, %v202_v54 }
  0xb8   :  { %v208_v58 = vadd.f32 %v1140_v52, %v203_v57 }
  0xb9   :  { %1078 = vmatmul.msk.f32.vlgmr.msra.gmra.mxu0 %vm141_vm0, %v207_v56 }
  0xc1   :  { %1079 = vmatmul.msk.f32.gmra.mxu0 %vm141_vm0, %v208_v58 }
 0x136   :  { %v240_v60 = vpop.f32.mrf.mxu0 }
 0x137   :  { %v1532_v61 = vadd.f32 %v1141_v59, %v240_v60 }
 0x139   :  { %321 = vrot.lane.b32.xlu1 %v1532_v61, %s1384_s22  ;;  %247 = vrot.lane.b32.xlu2 %v1532_v61, %s1385_s2 }
 0x13e   :  { %v243_v62 = vpop.f32.mrf.mxu0 }
 0x13f   :  { %v1537_v63 = vadd.f32 %v1141_v59, %v243_v62 }
 0x141   :  { %275 = vrot.lane.b32.xlu0 %v1537_v63, %s1385_s2  ;;  %403 = vrot.lane.b32.xlu1 %v1537_v63, %s1386_s23  ;;  %v1134_v21 = vpack.i.bf16 %v1537_v63, %v1532_v61 }
 0x149   :  { %405 = vrot.lane.b32.xlu0 %v1537_v63, %s1387_s4  ;;  %507 = vrot.lane.b32.xlu1 %v1532_v61, %s1388_s24 }
 0x151   :  { %377 = vrot.lane.b32.xlu0 %v1532_v61, %s1387_s4  ;;  %637 = vrot.lane.b32.xlu1 %v1532_v61, %s1389_s5 }
 0x159   :  { %505 = vrot.lane.b32.xlu0 %v1532_v61, %s1390_s25  ;;  %535 = vrot.lane.b32.xlu1 %v1537_v63, %s1388_s24 }
 0x161   :  { %635 = vrot.lane.b32.xlu0 %v1532_v61, %s1391_s0  ;;  %665 = vrot.lane.b32.xlu1 %v1537_v63, %s1389_s5 }
 0x169   :  { %533 = vrot.lane.b32.xlu0 %v1537_v63, %s1390_s25 }
 0x193   :  { %v248_v2 = vpop.permute.xlu2 %247 }
 0x194   :  { %1080 = vmatpush.xpose.msk.msra.mxu1 %vm249_vm8, %v248_v2 }
 0x197   :  { %1081 = vmatmul.msk.f32.vlgmr.msra.gmra.mxu1 %vm249_vm8, %v1532_v61 }
 0x1ab   :  { %v322_v3 = vpop.permute.xlu1 %321 }
 0x1ac   :  { %342 = vmatpush.msrb.mxu1 %v322_v3 }
 0x1b3   :  { %v276_v4 = vpop.permute.xlu0 %275  ;;  %v404_v5 = vpop.permute.xlu1 %403 }
 0x1b4   :  { %1082 = vmatpush.xpose.msk.msra.mxu2 %vm249_vm8, %v276_v4 }
 0x1b7   :  { %1083 = vmatmul.msk.f32.vlgmr.msra.gmra.mxu2 %vm249_vm8, %v1537_v63 }
 0x1bb   :  { %v406_v6 = vpop.permute.xlu0 %405  ;;  %v508_v7 = vpop.permute.xlu1 %507 }
 0x1bc   :  { %1088 = vmatpush.xpose.msk.msrb.mxu2 %vm249_vm8, %v406_v6 }
 0x1bf   :  { %1089 = vmatmul.msk.f32.vlgmr.msrb.gmra.mxu2 %vm249_vm8, %v404_v5 }
 0x1c0   :  { %1092 = vmatpush.xpose.msk.msra.mxu2 %vm249_vm8, %v508_v7 }
 0x1c3   :  { %v378_v8 = vpop.permute.xlu0 %377  ;;  %v638_v9 = vpop.permute.xlu1 %637 }
 0x1c4   :  { %1086 = vmatpush.xpose.msk.msra.mxu1 %vm249_vm8, %v378_v8  ;;  %1098 = vmatpush.xpose.msk.msrb.mxu2 %vm249_vm8, %v638_v9 }
 0x1cb   :  { %v506_v10 = vpop.permute.xlu0 %505  ;;  %v536_v11 = vpop.permute.xlu1 %535 }
 0x1cc   :  { %1093 = vmatmul.msk.f32.vlgmr.msra.gmra.mxu2 %vm249_vm8, %v506_v10  ;;  %1094 = vmatpush.xpose.msk.msrb.mxu0 %vm249_vm8, %v536_v11 }
 0x1d3   :  { %v636_v12 = vpop.permute.xlu0 %635  ;;  %v666_v16 = vpop.permute.xlu1 %665 }
 0x1d4   :  { %1099 = vmatmul.msk.f32.vlgmr.msrb.gmra.mxu2 %vm249_vm8, %v636_v12  ;;  %1100 = vmatpush.xpose.msk.msra.mxu0 %vm249_vm8, %v666_v16 }
 0x1db   :  { %v534_v13 = vpop.permute.xlu0 %533 }
 0x1dc   :  { %1095 = vmatmul.msk.f32.vlgmr.msrb.gmra.mxu0 %vm249_vm8, %v534_v13 }
 0x214   :  { %v271_v14 = vpop.f32.mrf.mxu1 }
 0x215   :  { %v301_v15 = vsel %vm249_vm8, %v271_v14, -inf }
 0x216   :  { %302 = vmax.xlane.f32.xlu2 %v301_v15 }
 0x22e   :  { %375 = vrot.lane.b32.xlu2 %v1532_v61, %s1386_s23 }
 0x236   :  { %663 = vrot.lane.b32.xlu2 %v1537_v63, %s1391_s0 }
 0x23a   :  { %v298_v17 = vpop.f32.mrf.mxu2 }
 0x23b   :  { %v304_v19 = vsel %vm249_vm8, %v298_v17, -inf }
 0x23c   :  { %305 = vmax.xlane.f32.xlu0 %v304_v19 }
 0x23e   :  { %347 = vrot.lane.b32.xlu2 %v1537_v63, %s1384_s22  ;;  %s1062_s22 = sshll.u32 %s1701_s13, 4  ;;  %s1063_s22 = int_to_ptr.hbm [resolvable:$true] %s1062_s22 }
 0x242   :  { %v428_v20 = vpop.f32.mrf.mxu2 }
 0x243   :  { %v434_v22 = vsel %vm249_vm8, %v428_v20, -inf }
 0x244   :  { %435 = vmax.xlane.f32.xlu1 %v434_v22 }
 0x24f   :  { %v530_v23 = vpop.f32.mrf.mxu2 }
 0x250   :  { %1135 = vrot.lane.b32.xlu0 %v1134_v21, %s1392_s26  ;;  %v561_v24 = vsel %vm249_vm8, %v530_v23, -inf }
 0x257   :  { %v660_v25 = vpop.f32.mrf.mxu2 }
 0x258   :  { %v691_v26 = vsel %vm249_vm8, %v660_v25, -inf }
 0x259   :  { %v558_v27 = vpop.f32.mrf.mxu0 }
 0x25a   :  { %v564_v28 = vsel %vm249_vm8, %v558_v27, -inf }
 0x267   :  { %562 = vmax.xlane.f32.xlu2 %v561_v24 }
 0x26f   :  { %692 = vmax.xlane.f32.xlu2 %v691_v26 }
 0x27a   :  { %565 = vmax.xlane.f32.xlu0 %v564_v28 }
 0x287   :  { %711 = vrot.lane.b32.xlu2 %v1532_v61, %s1393_s27 }
 0x289   :  { %v303_v29 = vpop.xlane.xlu2 %302 }
 0x28a   :  { %v307_v30 = vsub.f32 %v271_v14, %v303_v29 }
 0x28c   :  { %v309_v31 = vmul.f32 1.442695, %v307_v30 }
 0x28e   :  { %1153 = vpow2.f32 %v309_v31 }
 0x28f   :  { %607 = vrot.lane.b32.xlu2 %v1537_v63, %s1394_s28 }
 0x291   :  { %v376_v32 = vpop.permute.xlu2 %375 }
 0x294   :  { %v1154_v33 = vpop.eup %1153 }
 0x295   :  { %1084 = vmatmul.msk.f32.vlgmr.msrb.gmra.mxu1 %vm249_vm8, %v1154_v33  ;;  %v313_v10 = vsel %vm249_vm8, %v1154_v33, 0.0 }
 0x297   :  { %737 = vrot.lane.b32.xlu2 %v1537_v63, %s1393_s27 }
 0x299   :  { %v664_v34 = vpop.permute.xlu2 %663 }
 0x29a   :  { %1101 = vmatmul.msk.f32.vlgmr.msra.gmra.mxu0 %vm249_vm8, %v664_v34 }
 0x29d   :  { %1087 = vmatmul.msk.f32.vlgmr.msra.gmra.mxu1 %vm249_vm8, %v376_v32 }
 0x2a1   :  { %v348_v35 = vpop.permute.xlu2 %347 }
 0x2a2   :  { %368 = vmatpush.msra.mxu3 %v348_v35 }
 0x2af   :  { %v306_v36 = vpop.xlane.xlu0 %305 }
 0x2b0   :  { %v308_v37 = vsub.f32 %v298_v17, %v306_v36 }
 0x2b2   :  { %v311_v38 = vmul.f32 1.442695, %v308_v37 }
 0x2b4   :  { %1155 = vpow2.f32 %v311_v38 }
 0x2b7   :  { %v436_v43 = vpop.xlane.xlu1 %435 }
 0x2b8   :  { %v438_v44 = vsub.f32 %v428_v20, %v436_v43 }
 0x2ba   :  { %v1589_v39 = vpop.eup %1155  ;;  %v441_v45 = vmul.f32 1.442695, %v438_v44 }
 0x2bb   :  { %1085 = vmatmul.msk.f32.vlgmr.msra.gmra.mxu3 %vm249_vm8, %v1589_v39  ;;  %v316_v22 = vsel %vm249_vm8, %v1589_v39, 0.0 }
 0x2bc   :  { %1157 = vpow2.f32 %v441_v45 }
 0x2c2   :  { %v1136_v40 = vpop.permute.xlu0 %1135  ;;  %v1158_v46 = vpop.eup %1157 }
 0x2c3   :  { %v1138_v41 = vunpack.i.h.bf16 %v1136_v40  ;;  %v1137_v42 = vunpack.i.l.bf16 %v1136_v40  ;;  %v446_v63 = vsel %vm249_vm8, %v1158_v46, 0.0 }
 0x2c5   :  { %472 = vmatpush.msrb.mxu3 %v1137_v42  ;;  %498 = vmatpush.msrb.mxu1 %v1138_v41 }
 0x2c6   :  { %1091 = vmatmul.msk.f32.vlgmr.msrb.gmra.mxu1 %vm249_vm8, %v1158_v46 }
 0x2da   :  { %v563_v47 = vpop.xlane.xlu2 %562 }
 0x2db   :  { %v567_v48 = vsub.f32 %v530_v23, %v563_v47 }
 0x2dd   :  { %v569_v49 = vmul.f32 1.442695, %v567_v48  ;;  %v800_v48 = vld [vmem:[#allocation8 + $0x18] sm:$0xff] }
 0x2de   :  { %823 = vmatpush.msra.mxu2 %v800_v48 }
 0x2df   :  { %1159 = vpow2.f32 %v569_v49  ;;  %v799_v49 = vld [vmem:[#allocation8 + $0x10] sm:$0xff] }
 0x2e0   :  { %824 = vmatpush.msra.mxu2 %v799_v49 }
 0x2e2   :  { %v693_v50 = vpop.xlane.xlu2 %692 }
 0x2e3   :  { %v697_v51 = vsub.f32 %v660_v25, %v693_v50  ;;  %v798_v50 = vld [vmem:[#allocation8 + $0x8] sm:$0xff] }
 0x2e4   :  { %825 = vmatpush.msra.mxu2 %v798_v50 }
 0x2e5   :  { %v1160_v52 = vpop.eup %1159  ;;  %v699_v53 = vmul.f32 1.442695, %v697_v51  ;;  %v797_v51 = vld [vmem:[#allocation8] sm:$0xff] }
 0x2e6   :  { %v573_v54 = vsel %vm249_vm8, %v1160_v52, 0.0  ;;  %826 = vmatpush.msra.mxu2 %v797_v51 }
 0x2e7   :  { %1161 = vpow2.f32 %v699_v53  ;;  %574 = vadd.xlane.f32.xlu0 %v573_v54 }
 0x2ea   :  { %v712_v55 = vpop.permute.xlu2 %711 }
 0x2ed   :  { %v1162_v56 = vpop.eup %1161  ;;  %v566_v57 = vpop.xlane.xlu0 %565 }
 0x2ee   :  { %v568_v58 = vsub.f32 %v558_v27, %v566_v57  ;;  %v703_v59 = vsel %vm249_vm8, %v1162_v56, 0.0 }
 0x2ef   :  { %704 = vadd.xlane.f32.xlu0 %v703_v59 }
 0x2f0   :  { %v571_v60 = vmul.f32 1.442695, %v568_v58 }
 0x2f2   :  { %1163 = vpow2.f32 %v571_v60  ;;  %v608_v62 = vpop.permute.xlu2 %607 }
 0x2f3   :  { %628 = vmatpush.msra.mxu1 %v608_v62 }
 0x2f7   :  { %447 = vadd.xlane.f32.xlu0 %v446_v63 }
 0x2f8   :  { %v1164_v2 = vpop.eup %1163 }
 0x2f9   :  { %1097 = vmatmul.msk.f32.vlgmr.msra.gmra.mxu1 %vm249_vm8, %v1164_v2  ;;  %v576_v9 = vsel %vm249_vm8, %v1164_v2, 0.0 }
 0x2fa   :  { %v738_v3 = vpop.permute.xlu2 %737 }
 0x2fb   :  { %758 = vmatpush.msrb.mxu1 %v738_v3 }
 0x312   :  { %v1598_v4 = vpop.f32.mrf.mxu1 }
 0x317   :  { %v688_v7 = vpop.f32.mrf.mxu0 }
 0x318   :  { %v694_v8 = vsel %vm249_vm8, %v688_v7, -inf }
 0x31a   :  { %v400_v5 = vpop.f32.mrf.mxu1 }
 0x31b   :  { %v431_v6 = vsel %vm249_vm8, %v400_v5, -inf }
 0x31c   :  { %432 = vmax.xlane.f32.xlu1 %v431_v6 }
 0x335   :  { %581 = vrot.lane.b32.xlu1 %v1532_v61, %s1394_s28 }
 0x33e   :  { %v370_v26 = vpop.f32.mrf.mxu3 }
 0x343   :  { %v500_v32 = vpop.f32.mrf.mxu1 }
 0x35a   :  { %v575_v23 = vpop.xlane.xlu0 %574 }
 0x35f   :  { %695 = vmax.xlane.f32.xlu1 %v694_v8 }
 0x362   :  { %v705_v24 = vpop.xlane.xlu0 %704 }
 0x367   :  { %577 = vadd.xlane.f32.xlu1 %v576_v9  ;;  %v1142_v9 = vld [vmem:[%s1694_s6] ss:$0 sm:$0xff] }
 0x36a   :  { %v448_v27 = vpop.xlane.xlu0 %447 }
 0x36f   :  { %314 = vadd.xlane.f32.xlu1 %v313_v10 }
 0x376   :  { %v630_v42 = vpop.f32.mrf.mxu1 }
 0x38f   :  { %v433_v11 = vpop.xlane.xlu1 %432 }
 0x390   :  { %v437_v12 = vsub.f32 %v400_v5, %v433_v11 }
 0x392   :  { %v439_v13 = vmul.f32 1.442695, %v437_v12 }
 0x394   :  { %1165 = vpow2.f32 %v439_v13 }
 0x39a   :  { %v1166_v14 = vpop.eup %1165 }
 0x39b   :  { %1090 = vmatmul.msk.f32.vlgmr.msrb.gmra.mxu3 %vm249_vm8, %v1166_v14  ;;  %v443_v15 = vsel %vm249_vm8, %v1166_v14, 0.0 }
 0x39c   :  { %444 = vadd.xlane.f32.xlu2 %v443_v15 }
 0x3a7   :  { %v582_v61 = vpop.permute.xlu1 %581 }
 0x3a8   :  { %602 = vmatpush.msra.mxu3 %v582_v61 }
 0x3a9   :  { %1096 = vmatmul.msk.f32.vlgmr.msra.gmra.mxu3 %vm249_vm8, %v1160_v52 }
 0x3aa   :  { %732 = vmatpush.msrb.mxu3 %v712_v55 }
 0x3b1   :  { %1102 = vmatmul.msk.f32.vlgmr.msrb.gmra.mxu3 %vm249_vm8, %v1162_v56 }
 0x3d2   :  { %v696_v16 = vpop.xlane.xlu1 %695 }
 0x3d3   :  { %v698_v17 = vsub.f32 %v688_v7, %v696_v16 }
 0x3d5   :  { %v701_v19 = vmul.f32 1.442695, %v698_v17 }
 0x3d7   :  { %1167 = vpow2.f32 %v701_v19 }
 0x3da   :  { %v578_v37 = vpop.xlane.xlu1 %577 }
 0x3dd   :  { %v1168_v20 = vpop.eup %1167 }
 0x3de   :  { %1103 = vmatmul.msk.f32.vlgmr.msrb.gmra.mxu1 %vm249_vm8, %v1168_v20  ;;  %v706_v21 = vsel %vm249_vm8, %v1168_v20, 0.0 }
 0x3df   :  { %707 = vadd.xlane.f32.xlu0 %v706_v21  ;;  %v901_v21 = vld [vmem:[#allocation10 + $0x18] sm:$0xff] }
 0x3e0   :  { %924 = vmatpush.msrb.mxu0 %v901_v21 }
 0x3e2   :  { %v315_v52 = vpop.xlane.xlu1 %314 }
 0x3e7   :  { %317 = vadd.xlane.f32.xlu0 %v316_v22  ;;  %v900_v22 = vld [vmem:[#allocation10 + $0x10] sm:$0xff] }
 0x3e8   :  { %925 = vmatpush.msrb.mxu0 %v900_v22  ;;  %v1016_v22 = vld [vmem:[#allocation11 + $0x8] sm:$0xff] }
 0x40f   :  { %v445_v25 = vpop.xlane.xlu2 %444 }
 0x410   :  { %1169 = vrcp.f32 %v445_v25 }
 0x411   :  { %1171 = vrcp.f32 %v448_v27 }
 0x412   :  { %1173 = vrcp.f32 %v575_v23 }
 0x413   :  { %1175 = vrcp.f32 %v705_v24  ;;  %v899_v24 = vld [vmem:[#allocation10 + $0x8] sm:$0xff] }
 0x414   :  { %1177 = vrcp.f32 %v578_v37  ;;  %926 = vmatpush.msrb.mxu0 %v899_v24 }
 0x416   :  { %v1170_v28 = vpop.eup %1169 }
 0x417   :  { %v1172_v31 = vpop.eup %1171 }
 0x418   :  { %v504_v33 = vmul.f32 %v1172_v31, %v500_v32  ;;  %v1174_v34 = vpop.eup %1173 }
 0x419   :  { %v1176_v38 = vpop.eup %1175 }
 0x41a   :  { %v1178_v41 = vpop.eup %1177 }
 0x41b   :  { %v634_v43 = vmul.f32 %v1178_v41, %v630_v42 }
 0x41e   :  { %v474_v29 = vpop.f32.mrf.mxu3 }
 0x41f   :  { %v503_v30 = vmul.f32 %v1170_v28, %v474_v29 }
 0x421   :  { %767 = vrot.lane.b32.xlu1 %v503_v30, %s1378_s21 }
 0x429   :  { %769 = vrot.lane.b32.xlu1 %v504_v33, %s1378_s21 }
 0x42c   :  { %v604_v35 = vpop.f32.mrf.mxu3 }
 0x42d   :  { %v633_v36 = vmul.f32 %v1174_v34, %v604_v35 }
 0x42f   :  { %775 = vrot.lane.b32.xlu2 %v633_v36, %s1395_s29 }
 0x434   :  { %v734_v39 = vpop.f32.mrf.mxu3 }
 0x435   :  { %v763_v40 = vmul.f32 %v1176_v38, %v734_v39 }
 0x437   :  { %783 = vrot.lane.b32.xlu0 %v763_v40, %s1396_s3 }
 0x43f   :  { %777 = vrot.lane.b32.xlu0 %v634_v43, %s1395_s29 }
 0x452   :  { %v708_v44 = vpop.xlane.xlu0 %707 }
 0x453   :  { %1179 = vrcp.f32 %v708_v44 }
 0x454   :  { %1181 = vrcp.f32 %v315_v52 }
 0x459   :  { %v1180_v45 = vpop.eup %1179 }
 0x45a   :  { %v1182_v53 = vpop.eup %1181  ;;  %v318_v54 = vpop.xlane.xlu0 %317 }
 0x45b   :  { %v760_v46 = vpop.f32.mrf.mxu1  ;;  %v373_v56 = vmul.f32 %v1182_v53, %v1598_v4  ;;  %1183 = vrcp.f32 %v318_v54 }
 0x45c   :  { %v764_v47 = vmul.f32 %v1180_v45, %v760_v46 }
 0x45e   :  { %785 = vrot.lane.b32.xlu2 %v764_v47, %s1396_s3  ;;  %v1143_v47 = vld [vmem:[%s1695_s7] ss:$0 sm:$0xff] }
 0x461   :  { %v1184_v63 = vpop.eup %1183 }
 0x462   :  { %v374_v3 = vmul.f32 %v1184_v63, %v370_v26  ;;  %v898_v26 = vld [vmem:[#allocation10] sm:$0xff] }
 0x463   :  { %927 = vmatpush.msrb.mxu0 %v898_v26 }
 0x489   :  { %v776_v58 = vpop.permute.xlu2 %775 }
 0x493   :  { %v768_v55 = vpop.permute.xlu1 %767 }
 0x494   :  { %v789_v57 = vsel %vm249_vm8, %v373_v56, %v768_v55 }
 0x495   :  { %v792_v60 = vsel %vm791_vm9, %v789_v57, %v776_v58 }
 0x49b   :  { %v770_v2 = vpop.permute.xlu1 %769 }
 0x49c   :  { %v790_v6 = vsel %vm249_vm8, %v374_v3, %v770_v2  ;;  %v1145_v2 = vld [vmem:[%s1698_s10] ss:$0 sm:$0xff] }
 0x4a9   :  { %v784_v59 = vpop.permute.xlu0 %783 }
 0x4aa   :  { %v795_v62 = vsel %vm794_vm10, %v792_v60, %v784_v59 }
 0x4ab   :  { %1104 = vmatmul.msk.f32.vlgmr.msra.gmra.mxu2 %vm141_vm0, %v795_v62 }
 0x4b1   :  { %v778_v5 = vpop.permute.xlu0 %777 }
 0x4b2   :  { %v793_v7 = vsel %vm791_vm9, %v790_v6, %v778_v5 }
 0x4b8   :  { %v786_v8 = vpop.permute.xlu2 %785 }
 0x4b9   :  { %v796_v4 = vsel %vm794_vm10, %v793_v7, %v786_v8 }
 0x4ba   :  { %1105 = vmatmul.msk.f32.gmra.mxu2 %vm141_vm0, %v796_v4 }
 0x52e   :  { %v828_v10 = vpop.f32.mrf.mxu2 }
 0x52f   :  { %v829_v11 = vadd.f32 %v1142_v9, %v828_v10 }
 0x531   :  { %v1625_v12 = vadd.f32 %v829_v11, %v1502_v0 }
 0x533   :  { %v838_v13 = vsel %vm141_vm0, %v1625_v12, 0.0  ;;  %v846_v14 = vmul.f32 %v1625_v12, %v1625_v12 }
 0x534   :  { %839 = vadd.xlane.f32.xlu1 %v838_v13 }
 0x535   :  { %v848_v15 = vsel %vm141_vm0, %v846_v14, 0.0  ;;  %v1018_v14 = vld [vmem:[#allocation11 + $0x18] sm:$0xff] }
 0x536   :  { %849 = vadd.xlane.f32.xlu0 %v848_v15  ;;  %1041 = vmatpush.msra.mxu3 %v1018_v14 }
 0x53d   :  { %v831_v61 = vpop.f32.mrf.mxu2 }
 0x53e   :  { %v832_v16 = vadd.f32 %v1142_v9, %v831_v61 }
 0x540   :  { %v1633_v17 = vadd.f32 %v832_v16, %v1504_v1  ;;  %v1017_v16 = vld [vmem:[#allocation11 + $0x10] sm:$0xff] }
 0x541   :  { %1042 = vmatpush.msra.mxu3 %v1017_v16 }
 0x542   :  { %v841_v19 = vsel %vm141_vm0, %v1633_v17, 0.0  ;;  %v847_v0 = vmul.f32 %v1633_v17, %v1633_v17 }
 0x543   :  { %842 = vadd.xlane.f32.xlu2 %v841_v19  ;;  %1043 = vmatpush.msra.mxu3 %v1016_v22 }
 0x544   :  { %v851_v20 = vsel %vm141_vm0, %v847_v0, 0.0 }
 0x545   :  { %852 = vadd.xlane.f32.xlu1 %v851_v20 }
 0x5a7   :  { %v840_v23 = vpop.xlane.xlu1 %839 }
 0x5a8   :  { %v844_v25 = vmul.f32 %v840_v23, %v1516_v18  ;;  %v1015_v23 = vld [vmem:[#allocation11] sm:$0xff] }
 0x5a9   :  { %v850_v1 = vpop.xlane.xlu0 %849  ;;  %1044 = vmatpush.msra.mxu3 %v1015_v23 }
 0x5aa   :  { %v856_v27 = vmul.f32 %v844_v25, %v844_v25  ;;  %v854_v28 = vmul.f32 %v850_v1, %v1516_v18  ;;  %v862_v46 = vsub.f32 %v1625_v12, %v844_v25 }
 0x5ac   :  { %v858_v29 = vsub.f32 %v854_v28, %v856_v27 }
 0x5ae   :  { %v860_v30 = vmax.f32 %v858_v29, 0.0 }
 0x5b0   :  { %v864_v31 = vadd.f32 1e-05, %v860_v30 }
 0x5b2   :  { %1185 = vrsqrt.f32 %v864_v31  ;;  %vm872_vm12 = vweird.f32 %v864_v31 }
 0x5b6   :  { %v843_v32 = vpop.xlane.xlu2 %842 }
 0x5b7   :  { %v845_v33 = vmul.f32 %v843_v32, %v1516_v18 }
 0x5b8   :  { %v1186_v34 = vpop.eup %1185  ;;  %v853_v35 = vpop.xlane.xlu1 %852 }
 0x5b9   :  { %v867_v36 = vmul.f32 %v1186_v34, %v864_v31  ;;  %v857_v37 = vmul.f32 %v845_v33, %v845_v33  ;;  %v855_v38 = vmul.f32 %v853_v35, %v1516_v18  ;;  %vm873_vm11 = vweird.f32 %v1186_v34  ;;  %v1144_v18 = vld [vmem:[%s1696_s8] ss:$0 sm:$0xff] }
 0x5ba   :  { %vm874_vm13 = vmor %vm872_vm12, %vm873_vm11  ;;  %v863_v58 = vsub.f32 %v1633_v17, %v845_v33 }
 0x5bb   :  { %v868_v39 = vmul.f32 %v1186_v34, %v867_v36  ;;  %v859_v40 = vsub.f32 %v855_v38, %v857_v37 }
 0x5bd   :  { %v869_v41 = vmul.f32 0.5, %v868_v39  ;;  %v861_v42 = vmax.f32 %v859_v40, 0.0 }
 0x5bf   :  { %v870_v43 = vsub.f32 1.5, %v869_v41  ;;  %v865_v44 = vadd.f32 1e-05, %v861_v42 }
 0x5c1   :  { %v871_v45 = vmul.f32 %v1186_v34, %v870_v43  ;;  %1187 = vrsqrt.f32 %v865_v44  ;;  %vm882_vm15 = vweird.f32 %v865_v44 }
 0x5c3   :  { %v875_v48 = vsel %vm874_vm13, %v1186_v34, %v871_v45 }
 0x5c4   :  { %v886_v49 = vmul.f32 %v875_v48, %v862_v46 }
 0x5c6   :  { %v891_v50 = vmul.f32 %v1143_v47, %v886_v49 }
 0x5c7   :  { %v1188_v51 = vpop.eup %1187 }
 0x5c8   :  { %v896_v52 = vadd.f32 %v1144_v18, %v891_v50  ;;  %v877_v53 = vmul.f32 %v1188_v51, %v865_v44  ;;  %vm883_vm14 = vweird.f32 %v1188_v51 }
 0x5c9   :  { %vm884_vm1 = vmor %vm882_vm15, %vm883_vm14 }
 0x5ca   :  { %1106 = vmatmul.msk.f32.vlgmr.msrb.gmra.mxu0 %vm141_vm0, %v896_v52  ;;  %v878_v54 = vmul.f32 %v1188_v51, %v877_v53 }
 0x5cc   :  { %v879_v55 = vmul.f32 0.5, %v878_v54 }
 0x5ce   :  { %v880_v56 = vsub.f32 1.5, %v879_v55 }
 0x5d0   :  { %v881_v57 = vmul.f32 %v1188_v51, %v880_v56 }
 0x5d2   :  { %v885_v59 = vsel %vm884_vm1, %v1188_v51, %v881_v57 }
 0x5d3   :  { %v887_v60 = vmul.f32 %v885_v59, %v863_v58  ;;  %v1397_v58 = vmov -1.0  }
 0x5d5   :  { %v892_v62 = vmul.f32 %v1143_v47, %v887_v60 }
 0x5d7   :  { %v897_v63 = vadd.f32 %v1144_v18, %v892_v62 }
 0x5d9   :  { %1107 = vmatmul.msk.f32.gmra.mxu0 %vm141_vm0, %v897_v63 }
 0x647   :  { %v929_v3 = vpop.f32.mrf.mxu0 }
 0x648   :  { %v1657_v5 = vadd.f32 %v1145_v2, %v929_v3 }
 0x64a   :  { %v1660_v6 = vmul.f32 0.70710677, %v1657_v5 }
 0x64c   :  { %v943_v7 = vand.u32 2147483647, %v1660_v6  ;;  %vm939_vm10 = vcmp.ge.f32.partialorder %v1660_v6, 0.0 }
 0x64d   :  { %v941_v59 = vsel %vm939_vm10, 1.0, %v1397_v58 }
 0x64e   :  { %v945_v8 = vmul.f32 0.3275911, %v943_v7  ;;  %v997_v29 = vsub.f32 0.0, %v943_v7 }
 0x650   :  { %v947_v4 = vadd.f32 1.0, %v945_v8  ;;  %v999_v32 = vmul.f32 %v997_v29, %v943_v7 }
 0x652   :  { %1189 = vrcp.f32 %v947_v4  ;;  %v960_v19 = vand.u32 2147483648, %v947_v4  ;;  %v958_v21 = vand.u32 2147483647, %v947_v4  ;;  %vm954_vm3 = vweird.f32 %v947_v4 }
 0x653   :  { %v1001_v37 = vmul.f32 1.442695, %v999_v32 }
 0x654   :  { %v961_v1 = vor.u32 1.1754944e-38, %v960_v19  ;;  %vm959_vm5 = vcmp.eq.f32.partialorder %v958_v21, 8.507059e+37  ;;  %v1146_v21 = vld [vmem:[%s1700_s12] ss:$0 sm:$0xff] }
 0x656   :  { %v932_v9 = vpop.f32.mrf.mxu0 }
 0x657   :  { %v1663_v11 = vadd.f32 %v1145_v2, %v932_v9  ;;  %v935_v2 = vmul.f32 0.5, %v1657_v5 }
 0x658   :  { %v1190_v10 = vpop.eup %1189 }
 0x659   :  { %v950_v13 = vmul.f32 %v1190_v10, %v947_v4  ;;  %v1666_v15 = vmul.f32 0.70710677, %v1663_v11  ;;  %vm955_vm2 = vweird.f32 %v1190_v10 }
 0x65a   :  { %vm956_vm4 = vmor %vm954_vm3, %vm955_vm2 }
 0x65b   :  { %v951_v61 = vsub.f32 1.0, %v950_v13  ;;  %v944_v0 = vand.u32 2147483647, %v1666_v15  ;;  %vm940_vm11 = vcmp.ge.f32.partialorder %v1666_v15, 0.0 }
 0x65c   :  { %v942_v16 = vsel %vm940_vm11, 1.0, %v1397_v58 }
 0x65d   :  { %v952_v20 = vmul.f32 %v1190_v10, %v951_v61  ;;  %v946_v24 = vmul.f32 0.3275911, %v944_v0  ;;  %v998_v49 = vsub.f32 0.0, %v944_v0 }
 0x65f   :  { %v953_v25 = vadd.f32 %v1190_v10, %v952_v20  ;;  %v948_v26 = vadd.f32 1.0, %v946_v24  ;;  %v1000_v55 = vmul.f32 %v998_v49, %v944_v0  ;;  %v936_v0 = vmul.f32 0.5, %v1663_v11 }
 0x661   :  { %v957_v27 = vsel %vm956_vm4, %v1190_v10, %v953_v25  ;;  %1191 = vrcp.f32 %v948_v26  ;;  %v975_v40 = vand.u32 2147483648, %v948_v26  ;;  %v973_v43 = vand.u32 2147483647, %v948_v26 }
 0x662   :  { %v962_v28 = vsel %vm959_vm5, %v961_v1, %v957_v27  ;;  %1193 = vpow2.f32 %v1001_v37  ;;  %vm969_vm7 = vweird.f32 %v948_v26  ;;  %v1003_v63 = vmul.f32 1.442695, %v1000_v55 }
 0x663   :  { %v979_v30 = vmul.f32 1.0614054, %v962_v28  ;;  %v976_v46 = vor.u32 1.1754944e-38, %v975_v40  ;;  %vm974_vm9 = vcmp.eq.f32.partialorder %v973_v43, 8.507059e+37 }
 0x664   :  { %1195 = vpow2.f32 %v1003_v63 }
 0x665   :  { %v981_v31 = vadd.f32 -1.4531521, %v979_v30 }
 0x667   :  { %v983_v33 = vmul.f32 %v981_v31, %v962_v28  ;;  %v1192_v34 = vpop.eup %1191 }
 0x668   :  { %v965_v36 = vmul.f32 %v1192_v34, %v948_v26  ;;  %vm970_vm6 = vweird.f32 %v1192_v34  ;;  %v1194_v52 = vpop.eup %1193 }
 0x669   :  { %v985_v35 = vadd.f32 1.4214138, %v983_v33  ;;  %vm971_vm8 = vmor %vm969_vm7, %vm970_vm6 }
 0x66a   :  { %v966_v39 = vsub.f32 1.0, %v965_v36  ;;  %v1196_v13 = vpop.eup %1195 }
 0x66b   :  { %v987_v38 = vmul.f32 %v985_v35, %v962_v28 }
 0x66c   :  { %v967_v42 = vmul.f32 %v1192_v34, %v966_v39 }
 0x66d   :  { %v989_v41 = vadd.f32 -0.28449672, %v987_v38 }
 0x66e   :  { %v968_v45 = vadd.f32 %v1192_v34, %v967_v42 }
 0x66f   :  { %v991_v44 = vmul.f32 %v989_v41, %v962_v28 }
 0x670   :  { %v972_v48 = vsel %vm971_vm8, %v1192_v34, %v968_v45 }
 0x671   :  { %v993_v47 = vadd.f32 0.2548296, %v991_v44  ;;  %v977_v18 = vsel %vm974_vm9, %v976_v46, %v972_v48 }
 0x672   :  { %v980_v51 = vmul.f32 1.0614054, %v977_v18 }
 0x673   :  { %v995_v50 = vmul.f32 %v993_v47, %v962_v28 }
 0x674   :  { %v982_v54 = vadd.f32 -1.4531521, %v980_v51 }
 0x675   :  { %v1005_v53 = vmul.f32 %v1194_v52, %v995_v50 }
 0x676   :  { %v984_v57 = vmul.f32 %v982_v54, %v977_v18 }
 0x677   :  { %v1007_v56 = vsub.f32 1.0, %v1005_v53 }
 0x678   :  { %v986_v62 = vadd.f32 1.4214138, %v984_v57 }
 0x679   :  { %v1009_v60 = vmul.f32 %v1007_v56, %v941_v59 }
 0x67a   :  { %v988_v7 = vmul.f32 %v986_v62, %v977_v18 }
 0x67b   :  { %v1011_v3 = vadd.f32 1.0, %v1009_v60 }
 0x67c   :  { %v990_v4 = vadd.f32 -0.28449672, %v988_v7 }
 0x67d   :  { %v1013_v8 = vmul.f32 %v1011_v3, %v935_v2 }
 0x67e   :  { %v992_v6 = vmul.f32 %v990_v4, %v977_v18 }
 0x67f   :  { %1108 = vmatmul.msk.f32.vlgmr.msra.gmra.mxu3 %vm141_vm0, %v1013_v8 }
 0x680   :  { %v994_v9 = vadd.f32 0.2548296, %v992_v6 }
 0x682   :  { %v996_v10 = vmul.f32 %v994_v9, %v977_v18 }
 0x684   :  { %v1006_v14 = vmul.f32 %v1196_v13, %v996_v10 }
 0x686   :  { %v1008_v61 = vsub.f32 1.0, %v1006_v14 }
 0x688   :  { %v1010_v19 = vmul.f32 %v1008_v61, %v942_v16 }
 0x68a   :  { %v1012_v5 = vadd.f32 1.0, %v1010_v19 }
 0x68c   :  { %v1014_v20 = vmul.f32 %v1012_v5, %v936_v0 }
 0x68e   :  { %1109 = vmatmul.msk.f32.gmra.mxu3 %vm141_vm0, %v1014_v20 }
 0x702   :  { %v1046_v22 = vpop.f32.mrf.mxu3 }
 0x703   :  { %v1047_v23 = vadd.f32 %v1146_v21, %v1046_v22 }
 0x705   :  { %v1052_v24 = vadd.f32 %v1047_v23, %v1625_v12 }
 0x707   :  { %1054 = vst.msk [vmem:[#allocation13] sm:$0xff] %vm141_vm0, %v1052_v24 }
 0x711   :  { %v1049_v15 = vpop.f32.mrf.mxu3 }
 0x712   :  { %v1050_v11 = vadd.f32 %v1146_v21, %v1049_v15 }
 0x714   :  { %v1053_v25 = vadd.f32 %v1050_v11, %v1633_v17 }
 0x716   :  { %1055 = vst.msk [vmem:[#allocation13 + $0x8] sm:$0xff] %vm141_vm0, %v1053_v25 }
 0x717   :  { %1068 = dma.vmem_to_hbm [thread:$0]  %s1061_s18, 256, %s1063_s22, [#allocation4], %s1377_s1, %s1377_s1, %s1378_s21  }
 0x718   :  { %1373 = dma.done.wait [#allocation4], 256  }
 0x719   :  { %1374 = vsyncadd [#allocation4], 4294967040 }
 0x71a   :  { %1073 = vsyncpa [#allocation3], 1 }
 0x71b   :  { %1074 = vsyncpa [#allocation6], 1 }
 0x71c   :  { %1075 = vsyncpa [#allocation9], 1 }
 0x71d   :  { %1076 = vsyncpa [#allocation12], 1 }
 0x71e   :  { %1077 = vsyncpa [#allocation4], 1 }

</bundles_post_ra>
